<compile_context>
chip_gen: v7x
topology: tpu7x:2x2x1
jax: 0.10.0
libtpu: 0.0.40
codegen_flags: <defaults>
</compile_context>

<pallas_src>
import functools

import jax
import jax.numpy as jnp
from jax.experimental import pallas as pl
from jax.experimental.pallas import tpu as pltpu

_LANE = 128
_SUBLANE = 8


def _round_up(n, m):
    return ((n + m - 1) // m) * m


def _pad2d(a, rows, cols):
    return jnp.pad(a, ((0, rows - a.shape[0]), (0, cols - a.shape[1])))


# ----------------------------------------------------------------------------
# Kernel: one batch tile, folded-MLP forward (2 matmuls + bias + ReLU).
# ----------------------------------------------------------------------------
def _mlp_kernel(x_ref, w12_ref, b12_ref, w3_ref, b3_ref, o_ref):
    # fused fc1+fc2 (no activation between them in the original module);
    # f32 accumulation regardless of streaming dtype.
    h = jnp.dot(x_ref[...], w12_ref[...],
                preferred_element_type=jnp.float32) + b12_ref[...]
    h = jnp.maximum(h, 0.0)                      # ReLU (f32)
    # fc3
    out = jnp.dot(h.astype(w3_ref.dtype), w3_ref[...],
                  preferred_element_type=jnp.float32) + b3_ref[...]
    o_ref[...] = out.astype(o_ref.dtype)


# ----------------------------------------------------------------------------
# Parameter preparation: fold fc1+fc2, minimal padding, optional bf16 weights.
# Done ONCE, outside the per-call path.  Returns arrays only (jit-safe pytree).
# ----------------------------------------------------------------------------
def prepare_params(params, dtype=jnp.bfloat16):
    w1, b1 = params["w1"], params["b1"]
    w2, b2 = params["w2"], params["b2"]
    w3, b3 = params["w3"], params["b3"]

    # Fold fc1 and fc2 (no nonlinearity between them).
    w12 = w1 @ w2                 # (in, hid)
    b12 = b1 @ w2 + b2            # (1, hid)

    in_size, hid_size = w12.shape
    out_size = w3.shape[1]

    in_pad = _round_up(in_size, _SUBLANE)                  # 5 -> 8 (sublane only)
    hid_pad = _round_up(max(hid_size, _SUBLANE), _LANE)    # 10 -> 128 (h lane / MXU K)
    # out stays unpadded: block last dim == full array dim is a valid BlockSpec.

    return {
        "w12": _pad2d(w12, in_pad, hid_pad).astype(dtype),
        "b12": _pad2d(b12, 1, hid_pad).astype(jnp.float32),   # biases stay f32
        "w3": _pad2d(w3, hid_pad, out_size).astype(dtype),
        "b3": b3.astype(jnp.float32),
    }


def _choose_tile(B, tm_max):
    """Batch tile: multiple of 8; for large B give >= 2 grid steps (v7x megacore)."""
    tm_cap = max(_SUBLANE, (tm_max // _SUBLANE) * _SUBLANE)
    b_aligned = _round_up(max(B, 1), _SUBLANE)
    if b_aligned <= 2 * _SUBLANE:
        return b_aligned
    half = _round_up((b_aligned + 1) // 2, _SUBLANE)
    return min(tm_cap, half)


# ----------------------------------------------------------------------------
# Forward pass: batch-tiled pallas_call with resident (padded) weights.
# ----------------------------------------------------------------------------
@functools.partial(jax.jit, static_argnames=("tm_max",))
def performance_net_forward(x, prepared, *, tm_max=2048):
    """x: (B, input_size) f32.  prepared: output of prepare_params()."""
    w12, b12 = prepared["w12"], prepared["b12"]
    w3, b3 = prepared["w3"], prepared["b3"]

    B, in_size = x.shape                  # static Python ints at trace time
    in_pad, hid_pad = w12.shape
    out_size = w3.shape[1]

    # Stream x in the weights' dtype (bf16 by default); accumulation is f32.
    x = x.astype(w12.dtype)

    tm = _choose_tile(B, tm_max)
    b_pad = _round_up(B, tm)

    pad_rows = b_pad - B
    pad_cols = in_pad - in_size
    if pad_rows or pad_cols:
        # Tiny wrapper pad over (B, in_size); zero rows/cols are neutralized by
        # zero-padded weight rows and sliced-off output rows.
        x = jnp.pad(x, ((0, pad_rows), (0, pad_cols)))

    grid = (b_pad // tm,)

    out = pl.pallas_call(
        _mlp_kernel,
        out_shape=jax.ShapeDtypeStruct((b_pad, out_size), jnp.float32),
        grid=grid,
        in_specs=[
            # x tile streams over the batch grid (minimal feature padding).
            pl.BlockSpec((tm, in_pad), lambda i: (i, 0)),
            # Weights / biases: constant index_map -> VMEM-resident across steps.
            pl.BlockSpec((in_pad, hid_pad), lambda i: (0, 0)),
            pl.BlockSpec((1, hid_pad), lambda i: (0, 0)),
            pl.BlockSpec((hid_pad, out_size), lambda i: (0, 0)),
            pl.BlockSpec((1, out_size), lambda i: (0, 0)),
        ],
        # Unpadded output columns: exactly B*out_size f32 written back.
        out_specs=pl.BlockSpec((tm, out_size), lambda i: (i, 0)),
        compiler_params=pltpu.CompilerParams(
            dimension_semantics=("parallel",),
            vmem_limit_bytes=32 * 1024 * 1024,
        ),
    )(x, w12, b12, w3, b3)

    if pad_rows:
        out = out[:B]
    return out


# ----------------------------------------------------------------------------
# Init + pure-JAX reference (mirrors the PyTorch module exactly).
# ----------------------------------------------------------------------------
def init_params(key, input_size=5, hidden_size=10, output_size=8):
    """torch.nn.Linear-style U(-1/sqrt(fan_in), +1/sqrt(fan_in)) init."""
    ks = jax.random.split(key, 6)

    def linear(kw, kb, fan_in, fan_out):
        bound = 1.0 / jnp.sqrt(jnp.float32(fan_in))
        w = jax.random.uniform(kw, (fan_in, fan_out), jnp.float32, -bound, bound)
        b = jax.random.uniform(kb, (1, fan_out), jnp.float32, -bound, bound)
        return w, b

    w1, b1 = linear(ks[0], ks[1], input_size, hidden_size)
    w2, b2 = linear(ks[2], ks[3], hidden_size, hidden_size)
    w3, b3 = linear(ks[4], ks[5], hidden_size, output_size)
    return {"w1": w1, "b1": b1, "w2": w2, "b2": b2, "w3": w3, "b3": b3}


def reference_forward(x, p):
    h1 = x @ p["w1"] + p["b1"]          # fc1 (no activation)
    h2 = h1 @ p["w2"] + p["b2"]         # fc2
    h2 = jnp.maximum(h2, 0.0)           # relu
    return h2 @ p["w3"] + p["b3"]       # fc3


if __name__ == "__main__":
    key = jax.random.PRNGKey(0)
    k_params, k_x_small, k_x_big = jax.random.split(key, 3)

    input_size, hidden_size, output_size = 5, 10, 8
    params = init_params(k_params, input_size, hidden_size, output_size)

    x_small = jax.random.normal(k_x_small, (4, input_size), jnp.float32)
    x_big = jax.random.normal(k_x_big, (1024, input_size), jnp.float32)
    ref_small = reference_forward(x_small, params)
    ref_big = reference_forward(x_big, params)

    # --- f32 path: tight correctness check against the PyTorch-style reference.
    prep_f32 = prepare_params(params, dtype=jnp.float32)

    out_small = jax.block_until_ready(performance_net_forward(x_small, prep_f32))
    assert out_small.shape == (4, output_size)
    assert jnp.allclose(out_small, ref_small, atol=1e-4, rtol=1e-4), \
        "small-batch mismatch vs reference (f32)"

    out_big = jax.block_until_ready(performance_net_forward(x_big, prep_f32))
    assert out_big.shape == (1024, output_size)
    assert jnp.allclose(out_big, ref_big, atol=1e-4, rtol=1e-4), \
        "large-batch mismatch vs reference (f32)"

    # --- default bf16-streaming path: halves HBM traffic, looser tolerance.
    prep_bf16 = prepare_params(params)  # bf16 weights / streamed x
    out_big_bf16 = jax.block_until_ready(performance_net_forward(x_big, prep_bf16))
    assert out_big_bf16.shape == (1024, output_size)
    max_err = float(jnp.max(jnp.abs(out_big_bf16 - ref_big)))
    assert max_err < 1e-1, f"bf16 streaming path deviates too much: {max_err}"

    print("KERNEL_OK")
</pallas_src>

<mosaic_0001>
module attributes {stable_mosaic.version = 11 : i64} {
  func.func @_mlp_kernel(%arg0: i32, %arg1: memref<8x8xf32, #tpu.memory_space<vmem>>, %arg2: memref<8x128xf32, #tpu.memory_space<vmem>>, %arg3: memref<1x128xf32, #tpu.memory_space<vmem>>, %arg4: memref<128x8xf32, #tpu.memory_space<vmem>>, %arg5: memref<1x8xf32, #tpu.memory_space<vmem>>, %arg6: memref<8x8xf32, #tpu.memory_space<vmem>>) attributes {dimension_semantics = [#tpu.dimension_semantics<parallel>], iteration_bounds = array<i64: 1>, scalar_prefetch = 0 : i64, scratch_operands = 0 : i64, tpu.core_type = #tpu.core_type<tc>, window_params = [{transform_indices = @transform_0, window_bounds = array<i64: 8, 8>}, {pipeline_mode = #tpu.pipeline_mode<synchronous>, transform_indices = @transform_1, window_bounds = array<i64: 8, 128>}, {pipeline_mode = #tpu.pipeline_mode<synchronous>, transform_indices = @transform_2, window_bounds = array<i64: 1, 128>}, {pipeline_mode = #tpu.pipeline_mode<synchronous>, transform_indices = @transform_3, window_bounds = array<i64: 128, 8>}, {pipeline_mode = #tpu.pipeline_mode<synchronous>, transform_indices = @transform_4, window_bounds = array<i64: 1, 8>}, {transform_indices = @transform_5, window_bounds = array<i64: 8, 8>}]} {
    %c0 = arith.constant 0 : index
    %c0_0 = arith.constant 0 : index
    %0 = vector.load %arg1[%c0, %c0_0] : memref<8x8xf32, #tpu.memory_space<vmem>>, vector<8x8xf32>
    %c0_1 = arith.constant 0 : index
    %c0_2 = arith.constant 0 : index
    %1 = vector.load %arg2[%c0_1, %c0_2] : memref<8x128xf32, #tpu.memory_space<vmem>>, vector<8x128xf32>
    %cst = arith.constant dense<0.000000e+00> : vector<8x128xf32>
    %2 = tpu.matmul %0, %1, %cst {dimension_numbers = #tpu.dot_dimension_numbers<[1], [0], [0], [1], [0, 0, 1, 1], [], []>} : vector<8x8xf32>, vector<8x128xf32>, vector<8x128xf32> -> vector<8x128xf32>
    %c0_3 = arith.constant 0 : index
    %c0_4 = arith.constant 0 : index
    %3 = vector.load %arg3[%c0_3, %c0_4] : memref<1x128xf32, #tpu.memory_space<vmem>>, vector<1x128xf32>
    %4 = vector.broadcast %3 : vector<1x128xf32> to vector<8x128xf32>
    %5 = arith.addf %2, %4 : vector<8x128xf32>
    %cst_5 = arith.constant 0.000000e+00 : f32
    %6 = vector.broadcast %cst_5 : f32 to vector<8x128xf32>
    %7 = arith.maximumf %5, %6 : vector<8x128xf32>
    %c0_6 = arith.constant 0 : index
    %c0_7 = arith.constant 0 : index
    %8 = vector.load %arg4[%c0_6, %c0_7] : memref<128x8xf32, #tpu.memory_space<vmem>>, vector<128x8xf32>
    %cst_8 = arith.constant dense<0.000000e+00> : vector<8x8xf32>
    %9 = tpu.matmul %7, %8, %cst_8 {dimension_numbers = #tpu.dot_dimension_numbers<[1], [0], [0], [1], [0, 0, 1, 1], [], []>} : vector<8x128xf32>, vector<128x8xf32>, vector<8x8xf32> -> vector<8x8xf32>
    %c0_9 = arith.constant 0 : index
    %c0_10 = arith.constant 0 : index
    %10 = vector.load %arg5[%c0_9, %c0_10] : memref<1x8xf32, #tpu.memory_space<vmem>>, vector<1x8xf32>
    %11 = vector.broadcast %10 : vector<1x8xf32> to vector<8x8xf32>
    %12 = arith.addf %9, %11 : vector<8x8xf32>
    %c0_11 = arith.constant 0 : index
    %c0_12 = arith.constant 0 : index
    %13 = vector.load %arg6[%c0_11, %c0_12] : memref<8x8xf32, #tpu.memory_space<vmem>>, vector<8x8xf32>
    tpu.vector_store %arg6[%c0_11, %c0_12], %12 {strides = array<i32>} : memref<8x8xf32, #tpu.memory_space<vmem>>, vector<8x8xf32>,
    return
  }
  func.func @transform_0(%arg0: i32) -> (i32, i32) {
    %c0_i32 = arith.constant 0 : i32
    %c0_i32_0 = arith.constant 0 : i32
    return %arg0, %c0_i32 : i32, i32
  }
  func.func @transform_1(%arg0: i32) -> (i32, i32) {
    %c0_i32 = arith.constant 0 : i32
    %c0_i32_0 = arith.constant 0 : i32
    %c0_i32_1 = arith.constant 0 : i32
    return %c0_i32, %c0_i32_0 : i32, i32
  }
  func.func @transform_2(%arg0: i32) -> (i32, i32) {
    %c0_i32 = arith.constant 0 : i32
    %c0_i32_0 = arith.constant 0 : i32
    %c0_i32_1 = arith.constant 0 : i32
    return %c0_i32, %c0_i32_0 : i32, i32
  }
  func.func @transform_3(%arg0: i32) -> (i32, i32) {
    %c0_i32 = arith.constant 0 : i32
    %c0_i32_0 = arith.constant 0 : i32
    %c0_i32_1 = arith.constant 0 : i32
    return %c0_i32, %c0_i32_0 : i32, i32
  }
  func.func @transform_4(%arg0: i32) -> (i32, i32) {
    %c0_i32 = arith.constant 0 : i32
    %c0_i32_0 = arith.constant 0 : i32
    %c0_i32_1 = arith.constant 0 : i32
    return %c0_i32, %c0_i32_0 : i32, i32
  }
  func.func @transform_5(%arg0: i32) -> (i32, i32) {
    %c0_i32 = arith.constant 0 : i32
    %c0_i32_0 = arith.constant 0 : i32
    return %arg0, %c0_i32 : i32, i32
  }
}

</mosaic_0001>

<bundles_post_ra>
// kernel: performance_net_forward.1
= control target key start
LH: loop header
LB: loop body
LE: loop exit
PB: predicated region body
PF: predicated region fallthrough
CT: control target
= control target key end

     0   :  { %vm29_vm0 = vcmask 64512   ;;  %v291_v0 = vmov 0.0   ;;  %vm292_vm1 = vmmov 0   ;;  %v293_v4 = vmov 0.0|0.0   ;;  %s389_s1 = inlined_call_operand.vmem [shape: f32[8,128], index: 1, kind: input, shape index: {}]   ;;  %s390_s0 = inlined_call_operand.vmem [shape: f32[8,8], index: 0, kind: input, shape index: {}]   ;;  %s391_s3 = inlined_call_operand.vmem [shape: f32[128,8], index: 3, kind: input, shape index: {}]   ;;  %s392_s2 = inlined_call_operand.vmem [shape: f32[1,128], index: 2, kind: input, shape index: {}]   ;;  %s393_s4 = inlined_call_operand.vmem [shape: f32[1,8], index: 4, kind: input, shape index: {}]   ;;  %s394_s5 = inlined_call_operand.vmem [shape: f32[8,8], index: 5, kind: output, shape index: {}]  }
   0x1   :  { %224 = vmatprep.subr.mxu0 %v291_v0  ;;  %v21_v1 = vld [vmem:[%s389_s1] sm:$0xff]  ;;  %226 = vmatprep.mubr.msk.f32.mxu0 %vm292_vm1, %v291_v0  ;;  %v105_v5 = vld [vmem:[%s391_s3 + $0x8] sm:$0xff]  ;;  %v106_v6 = vld [vmem:[%s391_s3 + $0x10] sm:$0xff] }
   0x2   :  { %v20_v2 = vld [vmem:[%s390_s0] sm:$0xff]  ;;  %225 = vmatpush3.msra.mxu0 %v21_v1  ;;  %264 = vmatprep.subr.bf16.mxu1 %v293_v4  ;;  %v107_v7 = vld [vmem:[%s391_s3 + $0x18] sm:$0xff]  ;;  %v109_v11 = vld [vmem:[%s391_s3 + $0x28] sm:$0xff] }
   0x3   :  { %v104_v3 = vld [vmem:[%s391_s3] sm:$0xff]  ;;  %227 = vmatmul.mubr.msk.f32.vlgmr.msra.gmra.mrb[0].mxu0 %vm29_vm0, %v20_v2  ;;  %261 = vmatprep.mubr.msk.f32.mxu1 %vm292_vm1, %v291_v0  ;;  %v268_v9 = vpack.c.bf16 %v107_v7, %v106_v6  ;;  %v110_v13 = vld [vmem:[%s391_s3 + $0x30] sm:$0xff]  ;;  %v111_v14 = vld [vmem:[%s391_s3 + $0x38] sm:$0xff] }
   0x4   :  { %v265_v8 = vpack.c.bf16 %v105_v5, %v104_v3  ;;  %v108_v10 = vld [vmem:[%s391_s3 + $0x20] sm:$0xff]  ;;  %v274_v15 = vpack.c.bf16 %v111_v14, %v110_v13  ;;  %v113_v17 = vld [vmem:[%s391_s3 + $0x48] sm:$0xff]  ;;  %v114_v19 = vld [vmem:[%s391_s3 + $0x50] sm:$0xff] }
   0x5   :  { %v271_v12 = vpack.c.bf16 %v109_v11, %v108_v10  ;;  %v112_v16 = vld [vmem:[%s391_s3 + $0x40] sm:$0xff]  ;;  %v115_v20 = vld [vmem:[%s391_s3 + $0x58] sm:$0xff]  ;;  %v117_v23 = vld [vmem:[%s391_s3 + $0x68] sm:$0xff] }
   0x6   :  { %266 = vmatpush3.bf16.msra.mxu1 %v265_v8  ;;  %v277_v18 = vpack.c.bf16 %v113_v17, %v112_v16  ;;  %v280_v21 = vpack.c.bf16 %v115_v20, %v114_v19  ;;  %v116_v22 = vld [vmem:[%s391_s3 + $0x60] sm:$0xff]  ;;  %v118_v25 = vld [vmem:[%s391_s3 + $0x70] sm:$0xff]  ;;  %v119_v26 = vld [vmem:[%s391_s3 + $0x78] sm:$0xff] }
   0x7   :  { %267 = vmatprep.subr.bf16.mxu1 %v293_v4  ;;  %v283_v24 = vpack.c.bf16 %v117_v23, %v116_v22  ;;  %v286_v27 = vpack.c.bf16 %v119_v26, %v118_v25  ;;  %v202_v28 = vld [vmem:[%s392_s2] ss:$0 sm:$0xff] }
   0x8   :  { %v204_v33 = vld [vmem:[%s393_s4] ss:$0 sm:$0xff] }
   0xa   :  { %269 = vmatpush3.bf16.msra.mxu1 %v268_v9 }
   0xb   :  { %270 = vmatprep.subr.bf16.mxu1 %v293_v4 }
   0xe   :  { %272 = vmatpush3.bf16.msra.mxu1 %v271_v12 }
   0xf   :  { %273 = vmatprep.subr.bf16.mxu1 %v293_v4 }
  0x12   :  { %275 = vmatpush3.bf16.msra.mxu1 %v274_v15 }
  0x13   :  { %276 = vmatprep.subr.bf16.mxu1 %v293_v4 }
  0x16   :  { %278 = vmatpush3.bf16.msra.mxu1 %v277_v18 }
  0x17   :  { %279 = vmatprep.subr.bf16.mxu1 %v293_v4 }
  0x1a   :  { %281 = vmatpush3.bf16.msra.mxu1 %v280_v21 }
  0x1b   :  { %282 = vmatprep.subr.bf16.mxu1 %v293_v4 }
  0x1e   :  { %284 = vmatpush3.bf16.msra.mxu1 %v283_v24 }
  0x1f   :  { %285 = vmatprep.subr.bf16.mxu1 %v293_v4 }
  0x22   :  { %287 = vmatpush3.bf16.msra.mxu1 %v286_v27 }
  0xd6   :  { %v99_v29 = vpop.f32.mrb[0].mxu0 }
  0xd7   :  { %v100_v30 = vadd.f32 %v202_v28, %v99_v29  ;;  %v228_v31 = vpop.f32.mrb[1].mxu0 }
  0xd9   :  { %v103_v32 = vmax.f32 %v100_v30, 0.0 }
  0xdb   :  { %262 = vmatmul.mubr.f32.vlgmr.msra.gmra.mrb[0].mxu1 %v103_v32 }
 0x1ae   :  { %v193_v34 = vpop.f32.mrb[0].mxu1 }
 0x1af   :  { %v194_v35 = vadd.f32 %v204_v33, %v193_v34  ;;  %v263_v36 = vpop.f32.mrb[1].mxu1 }
 0x1b1   :  { %197 = vst.msk [vmem:[%s394_s5] sm:$0xff] %vm29_vm0, %v194_v35 }

</bundles_post_ra>
